<compile_context>
chip_gen: v5e
topology: v5e:2x2
jax: 0.10.0
libtpu: 0.0.40
codegen_flags: <defaults>
</compile_context>

<pallas_src>
import jax
import jax.numpy as jnp
from jax.experimental import pallas as pl
from jax.experimental.pallas import tpu as pltpu

HIDDEN1 = 256
HIDDEN2 = 128
HIDDEN3 = 64          # logical third hidden width
HIDDEN3_PAD = 128     # padded to a full lane group


def _round_up(x, m):
    return (x + m - 1) // m * m


def dqn_kernel(x_ref,
               w1_ref, b1_ref,
               w2_ref, b2_ref,
               w3_ref, b3_ref,
               w4_ref, b4_ref,
               o_ref):
    """One batch tile: x [TB, S] -> Q-values [TB, action_dim]."""
    dt = w1_ref.dtype          # MXU operand dtype (bf16 default); accum is f32
    x = x_ref[...]

    # Layer 1: Linear(S, 256) + ReLU   (Dropout(0.1) == identity in eval mode)
    h = jnp.dot(x, w1_ref[...], preferred_element_type=jnp.float32) + b1_ref[...]
    h = jnp.maximum(h, 0.0).astype(dt)

    # Layer 2: Linear(256, 128) + ReLU (Dropout(0.1) == identity in eval mode)
    h = jnp.dot(h, w2_ref[...], preferred_element_type=jnp.float32) + b2_ref[...]
    h = jnp.maximum(h, 0.0).astype(dt)

    # Layer 3: Linear(128, 64) + ReLU  (64 -> 128 lanes via zero columns; exact)
    h = jnp.dot(h, w3_ref[...], preferred_element_type=jnp.float32) + b3_ref[...]
    h = jnp.maximum(h, 0.0).astype(dt)

    # Layer 4: Linear(64, action_dim) -- w4 rows padded 64->128 with zeros (exact)
    out = jnp.dot(h, w4_ref[...], preferred_element_type=jnp.float32) + b4_ref[...]
    o_ref[...] = out.astype(o_ref.dtype)


def prepare_params(params, *, use_bf16=True):
    """One-time pad + cast of the weights (hoisted out of the per-call path).

    params holds logically-shaped transposed weights ([in, out]) and [1, out]
    biases; returns kernel-ready arrays (hidden3 dims padded 64->128, weights
    cast to bf16 by default, biases kept f32 for the f32 bias-add/ReLU path).
    """
    w_dtype = jnp.bfloat16 if use_bf16 else jnp.float32
    w3 = jnp.pad(params["w3"], ((0, 0), (0, HIDDEN3_PAD - HIDDEN3)))   # [128,128]
    b3 = jnp.pad(params["b3"], ((0, 0), (0, HIDDEN3_PAD - HIDDEN3)))   # [1,128]
    w4 = jnp.pad(params["w4"], ((0, HIDDEN3_PAD - HIDDEN3), (0, 0)))   # [128,A]
    return {
        "w1": params["w1"].astype(w_dtype), "b1": params["b1"].astype(jnp.float32),
        "w2": params["w2"].astype(w_dtype), "b2": params["b2"].astype(jnp.float32),
        "w3": w3.astype(w_dtype),           "b3": b3.astype(jnp.float32),
        "w4": w4.astype(w_dtype),           "b4": params["b4"].astype(jnp.float32),
    }


def dqn_forward(x, prepared, *, batch_tile=1024):
    """x: [B, state_dim] float32.  prepared: output of prepare_params()."""
    B, S = x.shape
    action_dim = prepared["w4"].shape[1]
    w_dtype = prepared["w1"].dtype
    x = x.astype(w_dtype)

    # bf16 packs 2 rows per sublane -> batch tiles multiple of 16 (8 for f32).
    row_align = 16 if w_dtype == jnp.bfloat16 else 8
    tb = max(row_align, min(batch_tile, _round_up(B, row_align)))
    tb = _round_up(tb, row_align)
    b_pad = _round_up(B, tb)
    # v7x megacore: keep >= 2 "parallel" grid steps when the batch is big
    # enough so the batch axis can shard across both TensorCores.
    if b_pad // tb < 2 and b_pad // 2 >= row_align:
        tb = _round_up(b_pad // 2, row_align)
        b_pad = _round_up(B, tb)

    if b_pad != B:
        x = jnp.pad(x, ((0, b_pad - B), (0, 0)))
    grid = (b_pad // tb,)

    x_spec = pl.BlockSpec((tb, S), lambda i: (i, 0))
    # Output last dim == full (unpadded) action_dim: masked lane stores but
    # ~16x fewer HBM writeback bytes than a 128-lane pad, and no wrapper
    # lane-slice over a padded array afterwards.
    out_spec = pl.BlockSpec((tb, action_dim), lambda i: (i, 0))
    const = lambda a: pl.BlockSpec(a.shape, lambda i: (0,) * a.ndim)  # VMEM-resident

    weights = (prepared["w1"], prepared["b1"],
               prepared["w2"], prepared["b2"],
               prepared["w3"], prepared["b3"],
               prepared["w4"], prepared["b4"])

    out = pl.pallas_call(
        dqn_kernel,
        out_shape=jax.ShapeDtypeStruct((b_pad, action_dim), jnp.float32),
        grid_spec=pl.GridSpec(
            grid=grid,
            in_specs=[x_spec] + [const(w) for w in weights],
            out_specs=out_spec,
        ),
        compiler_params=pltpu.CompilerParams(
            dimension_semantics=("parallel",),
        ),
    )(x, *weights)

    return out if b_pad == B else out[:B]


def init_dqn_params(key, state_dim, action_dim):
    """Deterministic init.  Weights stored transposed: [in_features, out_features]."""
    dims = [(state_dim, HIDDEN1), (HIDDEN1, HIDDEN2), (HIDDEN2, HIDDEN3),
            (HIDDEN3, action_dim)]
    params = {}
    for i, (fan_in, fan_out) in enumerate(dims, start=1):
        key, kw, kb = jax.random.split(key, 3)
        bound = 1.0 / jnp.sqrt(fan_in)
        params[f"w{i}"] = jax.random.uniform(
            kw, (fan_in, fan_out), jnp.float32, minval=-bound, maxval=bound)
        params[f"b{i}"] = jax.random.uniform(
            kb, (1, fan_out), jnp.float32, minval=-bound, maxval=bound)
    return params


def dqn_reference(x, params, operand_dtype=None):
    """Pure-JAX reference (eval-mode forward).

    With operand_dtype=bf16 it applies the same operand rounding the bf16
    kernel path uses (accumulation stays f32), so comparisons stay tight.
    """
    def lin(h, w, b):
        if operand_dtype is not None:
            h = h.astype(operand_dtype)
            w = w.astype(operand_dtype)
        return jnp.dot(h, w, preferred_element_type=jnp.float32) + b

    h = jnp.maximum(lin(x, params["w1"], params["b1"]), 0.0)
    h = jnp.maximum(lin(h, params["w2"], params["b2"]), 0.0)
    h = jnp.maximum(lin(h, params["w3"], params["b3"]), 0.0)
    return lin(h, params["w4"], params["b4"])


if __name__ == "__main__":
    state_dim = 32
    action_dim = 8
    batch = 2

    key = jax.random.PRNGKey(0)
    key, kx = jax.random.split(key)
    x = jax.random.normal(kx, (batch, state_dim), dtype=jnp.float32)
    params = init_dqn_params(key, state_dim, action_dim)

    # --- default bf16 MXU path ---
    prepared_bf16 = prepare_params(params, use_bf16=True)
    out_bf16 = jax.block_until_ready(dqn_forward(x, prepared_bf16))
    assert out_bf16.shape == (batch, action_dim), out_bf16.shape
    ref_bf16 = dqn_reference(x, params, operand_dtype=jnp.bfloat16)
    assert jnp.allclose(out_bf16, ref_bf16, atol=1e-2, rtol=1e-2), \
        "bf16 path mismatch vs bf16-operand reference"
    ref_f32 = dqn_reference(x, params)
    assert jnp.allclose(out_bf16, ref_f32, atol=1e-1, rtol=1e-1), \
        "bf16 path diverged too far from f32 reference"

    # --- f32 fallback path ---
    prepared_f32 = prepare_params(params, use_bf16=False)
    out_f32 = jax.block_until_ready(dqn_forward(x, prepared_f32))
    assert out_f32.shape == (batch, action_dim), out_f32.shape
    assert jnp.allclose(out_f32, ref_f32, atol=1e-4, rtol=1e-4), \
        "f32 path mismatch vs reference"

    print("KERNEL_OK")
</pallas_src>

<mosaic_0001>
module attributes {stable_mosaic.version = 11 : i64} {
  func.func @dqn_kernel(%arg0: i32, %arg1: memref<16x32xbf16, #tpu.memory_space<vmem>>, %arg2: memref<32x256xbf16, #tpu.memory_space<vmem>>, %arg3: memref<1x256xf32, #tpu.memory_space<vmem>>, %arg4: memref<256x128xbf16, #tpu.memory_space<vmem>>, %arg5: memref<1x128xf32, #tpu.memory_space<vmem>>, %arg6: memref<128x128xbf16, #tpu.memory_space<vmem>>, %arg7: memref<1x128xf32, #tpu.memory_space<vmem>>, %arg8: memref<128x8xbf16, #tpu.memory_space<vmem>>, %arg9: memref<1x8xf32, #tpu.memory_space<vmem>>, %arg10: memref<16x8xf32, #tpu.memory_space<vmem>>) attributes {dimension_semantics = [#tpu.dimension_semantics<parallel>], iteration_bounds = array<i64: 1>, scalar_prefetch = 0 : i64, scratch_operands = 0 : i64, tpu.core_type = #tpu.core_type<tc>, window_params = [{transform_indices = @transform_0, window_bounds = array<i64: 16, 32>}, {pipeline_mode = #tpu.pipeline_mode<synchronous>, transform_indices = @transform_1, window_bounds = array<i64: 32, 256>}, {pipeline_mode = #tpu.pipeline_mode<synchronous>, transform_indices = @transform_2, window_bounds = array<i64: 1, 256>}, {pipeline_mode = #tpu.pipeline_mode<synchronous>, transform_indices = @transform_3, window_bounds = array<i64: 256, 128>}, {pipeline_mode = #tpu.pipeline_mode<synchronous>, transform_indices = @transform_4, window_bounds = array<i64: 1, 128>}, {pipeline_mode = #tpu.pipeline_mode<synchronous>, transform_indices = @transform_5, window_bounds = array<i64: 128, 128>}, {pipeline_mode = #tpu.pipeline_mode<synchronous>, transform_indices = @transform_6, window_bounds = array<i64: 1, 128>}, {pipeline_mode = #tpu.pipeline_mode<synchronous>, transform_indices = @transform_7, window_bounds = array<i64: 128, 8>}, {pipeline_mode = #tpu.pipeline_mode<synchronous>, transform_indices = @transform_8, window_bounds = array<i64: 1, 8>}, {transform_indices = @transform_9, window_bounds = array<i64: 16, 8>}]} {
    %c0 = arith.constant 0 : index
    %c0_0 = arith.constant 0 : index
    %0 = vector.load %arg1[%c0, %c0_0] : memref<16x32xbf16, #tpu.memory_space<vmem>>, vector<16x32xbf16>
    %c0_1 = arith.constant 0 : index
    %c0_2 = arith.constant 0 : index
    %1 = vector.load %arg2[%c0_1, %c0_2] : memref<32x256xbf16, #tpu.memory_space<vmem>>, vector<32x256xbf16>
    %cst = arith.constant dense<0.000000e+00> : vector<16x256xf32>
    %2 = tpu.matmul %0, %1, %cst {dimension_numbers = #tpu.dot_dimension_numbers<[1], [0], [0], [1], [0, 0, 1, 1], [], []>} : vector<16x32xbf16>, vector<32x256xbf16>, vector<16x256xf32> -> vector<16x256xf32>
    %c0_3 = arith.constant 0 : index
    %c0_4 = arith.constant 0 : index
    %3 = vector.load %arg3[%c0_3, %c0_4] : memref<1x256xf32, #tpu.memory_space<vmem>>, vector<1x256xf32>
    %4 = vector.broadcast %3 : vector<1x256xf32> to vector<16x256xf32>
    %5 = arith.addf %2, %4 : vector<16x256xf32>
    %cst_5 = arith.constant 0.000000e+00 : f32
    %6 = vector.broadcast %cst_5 : f32 to vector<16x256xf32>
    %7 = arith.maximumf %5, %6 : vector<16x256xf32>
    %8 = arith.truncf %7 : vector<16x256xf32> to vector<16x256xbf16>
    %c0_6 = arith.constant 0 : index
    %c0_7 = arith.constant 0 : index
    %9 = vector.load %arg4[%c0_6, %c0_7] : memref<256x128xbf16, #tpu.memory_space<vmem>>, vector<256x128xbf16>
    %cst_8 = arith.constant dense<0.000000e+00> : vector<16x128xf32>
    %10 = tpu.matmul %8, %9, %cst_8 {dimension_numbers = #tpu.dot_dimension_numbers<[1], [0], [0], [1], [0, 0, 1, 1], [], []>} : vector<16x256xbf16>, vector<256x128xbf16>, vector<16x128xf32> -> vector<16x128xf32>
    %c0_9 = arith.constant 0 : index
    %c0_10 = arith.constant 0 : index
    %11 = vector.load %arg5[%c0_9, %c0_10] : memref<1x128xf32, #tpu.memory_space<vmem>>, vector<1x128xf32>
    %12 = vector.broadcast %11 : vector<1x128xf32> to vector<16x128xf32>
    %13 = arith.addf %10, %12 : vector<16x128xf32>
    %cst_11 = arith.constant 0.000000e+00 : f32
    %14 = vector.broadcast %cst_11 : f32 to vector<16x128xf32>
    %15 = arith.maximumf %13, %14 : vector<16x128xf32>
    %16 = arith.truncf %15 : vector<16x128xf32> to vector<16x128xbf16>
    %c0_12 = arith.constant 0 : index
    %c0_13 = arith.constant 0 : index
    %17 = vector.load %arg6[%c0_12, %c0_13] : memref<128x128xbf16, #tpu.memory_space<vmem>>, vector<128x128xbf16>
    %cst_14 = arith.constant dense<0.000000e+00> : vector<16x128xf32>
    %18 = tpu.matmul %16, %17, %cst_14 {dimension_numbers = #tpu.dot_dimension_numbers<[1], [0], [0], [1], [0, 0, 1, 1], [], []>} : vector<16x128xbf16>, vector<128x128xbf16>, vector<16x128xf32> -> vector<16x128xf32>
    %c0_15 = arith.constant 0 : index
    %c0_16 = arith.constant 0 : index
    %19 = vector.load %arg7[%c0_15, %c0_16] : memref<1x128xf32, #tpu.memory_space<vmem>>, vector<1x128xf32>
    %20 = vector.broadcast %19 : vector<1x128xf32> to vector<16x128xf32>
    %21 = arith.addf %18, %20 : vector<16x128xf32>
    %cst_17 = arith.constant 0.000000e+00 : f32
    %22 = vector.broadcast %cst_17 : f32 to vector<16x128xf32>
    %23 = arith.maximumf %21, %22 : vector<16x128xf32>
    %24 = arith.truncf %23 : vector<16x128xf32> to vector<16x128xbf16>
    %c0_18 = arith.constant 0 : index
    %c0_19 = arith.constant 0 : index
    %25 = vector.load %arg8[%c0_18, %c0_19] : memref<128x8xbf16, #tpu.memory_space<vmem>>, vector<128x8xbf16>
    %cst_20 = arith.constant dense<0.000000e+00> : vector<16x8xf32>
    %26 = tpu.matmul %24, %25, %cst_20 {dimension_numbers = #tpu.dot_dimension_numbers<[1], [0], [0], [1], [0, 0, 1, 1], [], []>} : vector<16x128xbf16>, vector<128x8xbf16>, vector<16x8xf32> -> vector<16x8xf32>
    %c0_21 = arith.constant 0 : index
    %c0_22 = arith.constant 0 : index
    %27 = vector.load %arg9[%c0_21, %c0_22] : memref<1x8xf32, #tpu.memory_space<vmem>>, vector<1x8xf32>
    %28 = vector.broadcast %27 : vector<1x8xf32> to vector<16x8xf32>
    %29 = arith.addf %26, %28 : vector<16x8xf32>
    %c0_23 = arith.constant 0 : index
    %c0_24 = arith.constant 0 : index
    %30 = vector.load %arg10[%c0_23, %c0_24] : memref<16x8xf32, #tpu.memory_space<vmem>>, vector<16x8xf32>
    tpu.vector_store %arg10[%c0_23, %c0_24], %29 {strides = array<i32>} : memref<16x8xf32, #tpu.memory_space<vmem>>, vector<16x8xf32>,
    return
  }
  func.func @transform_0(%arg0: i32) -> (i32, i32) {
    %c0_i32 = arith.constant 0 : i32
    %c0_i32_0 = arith.constant 0 : i32
    return %arg0, %c0_i32 : i32, i32
  }
  func.func @transform_1(%arg0: i32) -> (i32, i32) {
    %c0_i32 = arith.constant 0 : i32
    %c0_i32_0 = arith.constant 0 : i32
    %c0_i32_1 = arith.constant 0 : i32
    return %c0_i32, %c0_i32_0 : i32, i32
  }
  func.func @transform_2(%arg0: i32) -> (i32, i32) {
    %c0_i32 = arith.constant 0 : i32
    %c0_i32_0 = arith.constant 0 : i32
    %c0_i32_1 = arith.constant 0 : i32
    return %c0_i32, %c0_i32_0 : i32, i32
  }
  func.func @transform_3(%arg0: i32) -> (i32, i32) {
    %c0_i32 = arith.constant 0 : i32
    %c0_i32_0 = arith.constant 0 : i32
    %c0_i32_1 = arith.constant 0 : i32
    return %c0_i32, %c0_i32_0 : i32, i32
  }
  func.func @transform_4(%arg0: i32) -> (i32, i32) {
    %c0_i32 = arith.constant 0 : i32
    %c0_i32_0 = arith.constant 0 : i32
    %c0_i32_1 = arith.constant 0 : i32
    return %c0_i32, %c0_i32_0 : i32, i32
  }
  func.func @transform_5(%arg0: i32) -> (i32, i32) {
    %c0_i32 = arith.constant 0 : i32
    %c0_i32_0 = arith.constant 0 : i32
    %c0_i32_1 = arith.constant 0 : i32
    return %c0_i32, %c0_i32_0 : i32, i32
  }
  func.func @transform_6(%arg0: i32) -> (i32, i32) {
    %c0_i32 = arith.constant 0 : i32
    %c0_i32_0 = arith.constant 0 : i32
    %c0_i32_1 = arith.constant 0 : i32
    return %c0_i32, %c0_i32_0 : i32, i32
  }
  func.func @transform_7(%arg0: i32) -> (i32, i32) {
    %c0_i32 = arith.constant 0 : i32
    %c0_i32_0 = arith.constant 0 : i32
    %c0_i32_1 = arith.constant 0 : i32
    return %c0_i32, %c0_i32_0 : i32, i32
  }
  func.func @transform_8(%arg0: i32) -> (i32, i32) {
    %c0_i32 = arith.constant 0 : i32
    %c0_i32_0 = arith.constant 0 : i32
    %c0_i32_1 = arith.constant 0 : i32
    return %c0_i32, %c0_i32_0 : i32, i32
  }
  func.func @transform_9(%arg0: i32) -> (i32, i32) {
    %c0_i32 = arith.constant 0 : i32
    %c0_i32_0 = arith.constant 0 : i32
    return %arg0, %c0_i32 : i32, i32
  }
}

</mosaic_0001>

<bundles_post_ra>
// kernel: tpu_custom_call.1
= control target key start
LH: loop header
LB: loop body
LE: loop exit
PB: predicated region body
PF: predicated region fallthrough
CT: control target
= control target key end

     0   :  { %14 = vsyncpa [#allocation3], 0  ;;  %s899_s0 = inlined_call_operand.hbm [shape: bf16[16,32], index: 0, kind: input, shape index: {}]   ;;  %s900_s1 = inlined_call_operand.hbm [shape: bf16[32,256], index: 1, kind: input, shape index: {}]   ;;  %s901_s2 = inlined_call_operand.vmem [shape: f32[1,256], index: 2, kind: input, shape index: {}]   ;;  %s902_s3 = inlined_call_operand.hbm [shape: bf16[256,128], index: 3, kind: input, shape index: {}]   ;;  %s903_s4 = inlined_call_operand.vmem [shape: f32[1,128], index: 4, kind: input, shape index: {}]   ;;  %s904_s5 = inlined_call_operand.vmem [shape: bf16[128,128], index: 5, kind: input, shape index: {}]   ;;  %s905_s6 = inlined_call_operand.vmem [shape: f32[1,128], index: 6, kind: input, shape index: {}]   ;;  %s906_s7 = inlined_call_operand.vmem [shape: bf16[128,8], index: 7, kind: input, shape index: {}]   ;;  %s907_s8 = inlined_call_operand.vmem [shape: f32[1,8], index: 8, kind: input, shape index: {}]   ;;  %s908_s9 = inlined_call_operand.vmem [shape: f32[16,8], index: 9, kind: output, shape index: {}]  }
   0x1   :  { %15 = vsyncpa [#allocation5], 0  ;;  %s33_s11 = sshll.u32 %s900_s1, 4  ;;  %s767_s12 = smov [#allocation4]   ;;  %s34_s11 = int_to_ptr.hbm [resolvable:$true] %s33_s11 }
   0x2   :  { %s35_s13 = sshll.u32 %s767_s12, 4  ;;  %s20_s16 = sshll.u32 %s899_s0, 4  ;;  %s36_s13 = int_to_ptr.vmem [resolvable:$true] %s35_s13  ;;  %s21_s16 = int_to_ptr.hbm [resolvable:$true] %s20_s16 }
   0x3   :  { %s768_s17 = smov 128   ;;  %s769_s18 = smov 8  }
   0x4   :  { %41 = dma.hbm_to_vmem [thread:$0]  %s34_s11, 512, %s36_s13, [#allocation5], %s768_s17, %s768_s17, %s769_s18  }
   0x5   :  { %s770_s19 = smov [#allocation2]   ;;  %s771_s21 = smov 64  }
   0x6   :  { %s22_s20 = sshll.u32 %s770_s19, 4  ;;  %s772_s22 = smov 4   ;;  %s23_s20 = int_to_ptr.vmem [resolvable:$true] %s22_s20 }
   0x7   :  { %28 = dma.hbm_to_vmem [thread:$0]  %s21_s16, 128, %s23_s20, [#allocation3], %s771_s21, %s771_s21, %s772_s22  }
   0x8   :  { %s48_s24 = sshll.u32 %s902_s3, 4  ;;  %s773_s25 = smov [#allocation6]   ;;  %s49_s24 = int_to_ptr.hbm [resolvable:$true] %s48_s24 }
   0x9   :  { %s50_s26 = sshll.u32 %s773_s25, 4  ;;  %s51_s26 = int_to_ptr.vmem [resolvable:$true] %s50_s26 }
   0xa   :  { %56 = dma.hbm_to_vmem [thread:$0]  %s49_s24, 2048, %s51_s26, [#allocation5], %s771_s21, %s771_s21, %s772_s22  }
   0xb   :  { %763 = dma.done.wait [#allocation3], 128  }
   0xc   :  { %764 = vsyncadd [#allocation3], 4294967168 }
   0xd   :  { %765 = dma.done.wait [#allocation5], 2560  }
   0xe   :  { %766 = vsyncadd [#allocation5], 4294964736  ;;  %v508_v0 = vld [vmem:[#allocation4 + $0x10] sm:$0xf]  ;;  %v648_v1 = vld [vmem:[#allocation4 + $0x14] sm:$0xf0] }
   0xf   :  { %v647_v2 = vld [vmem:[#allocation4 + $0x14] sm:$0xf]  ;;  %v509_v3 = vor.u32 %v648_v1, %v508_v0  ;;  %v510_v4 = vld [vmem:[#allocation4 + $0x18] sm:$0xf0]  ;;  %v500_v5 = vld [vmem:[#allocation4] sm:$0xf] }
  0x10   :  { %v646_v6 = vld [vmem:[#allocation4 + $0x4] sm:$0xf0]  ;;  %v513_v7 = vor.u32 %v647_v2, %v510_v4  ;;  %v645_v8 = vld [vmem:[#allocation4 + $0x4] sm:$0xf]  ;;  %v502_v9 = vld [vmem:[#allocation4 + $0x8] sm:$0xf0] }
  0x11   :  { %127 = vmatpush.bf16.msra.mxu0 %v509_v3  ;;  %v501_v10 = vor.u32 %v646_v6, %v500_v5  ;;  %v656_v11 = vld [vmem:[#allocation6 + $0x38] sm:$0xff]  ;;  %v505_v13 = vor.u32 %v645_v8, %v502_v9  ;;  %v655_v14 = vld [vmem:[#allocation6 + $0x30] sm:$0xff]  ;;  %vm117_vm0 = vcmask 261120   ;;  %v654_v17 = vld [vmem:[#allocation6 + $0x28] sm:$0xff]  ;;  %vm485_vm1 = vcmask 64512  }
  0x12   :  { %v664_v12 = vld [vmem:[#allocation6 + $0x78] sm:$0xff]  ;;  %141 = vmatpush.bf16.msra.mxu1 %v513_v7  ;;  %287 = vmatpush.bf16.msra.mxu2 %v656_v11  ;;  %v663_v15 = vld [vmem:[#allocation6 + $0x70] sm:$0xff]  ;;  %v662_v18 = vld [vmem:[#allocation6 + $0x68] sm:$0xff] }
  0x13   :  { %301 = vmatpush.bf16.msra.mxu3 %v664_v12  ;;  %v644_v16 = vld [vmem:[#allocation2] sm:$0xff]  ;;  %v653_v19 = vld [vmem:[#allocation6 + $0x20] sm:$0xff]  ;;  %v651_v23 = vld [vmem:[#allocation6 + $0x10] sm:$0xff] }
  0x14   :  { %v661_v20 = vld [vmem:[#allocation6 + $0x60] sm:$0xff]  ;;  %v652_v21 = vld [vmem:[#allocation6 + $0x18] sm:$0xff]  ;;  %v659_v24 = vld [vmem:[#allocation6 + $0x50] sm:$0xff] }
  0x15   :  { %128 = vmatpush.bf16.msra.mxu0 %v501_v10  ;;  %v660_v22 = vld [vmem:[#allocation6 + $0x58] sm:$0xff]  ;;  %v650_v25 = vld [vmem:[#allocation6 + $0x8] sm:$0xff]  ;;  %v649_v27 = vld [vmem:[#allocation6] sm:$0xff] }
  0x16   :  { %142 = vmatpush.bf16.msra.mxu1 %v505_v13  ;;  %288 = vmatpush.bf16.msra.mxu2 %v655_v14  ;;  %v658_v26 = vld [vmem:[#allocation6 + $0x48] sm:$0xff]  ;;  %v657_v28 = vld [vmem:[#allocation6 + $0x40] sm:$0xff]  ;;  %v672_v29 = vld [vmem:[%s904_s5 + $0x38] sm:$0xff] }
  0x17   :  { %302 = vmatpush.bf16.msra.mxu3 %v663_v15  ;;  %v671_v30 = vld [vmem:[%s904_s5 + $0x30] sm:$0xff]  ;;  %v670_v31 = vld [vmem:[%s904_s5 + $0x28] sm:$0xff]  ;;  %v669_v32 = vld [vmem:[%s904_s5 + $0x20] sm:$0xff] }
  0x18   :  { %514 = vmatmul.msk.bf16.vlgmr.msra.gmra.mxu0 %vm117_vm0, %v644_v16  ;;  %v86_v33 = vld [vmem:[%s901_s2] sm:$0x3]  ;;  %v668_v50 = vld [vmem:[%s904_s5 + $0x18] sm:$0xff]  ;;  %v667_v51 = vld [vmem:[%s904_s5 + $0x10] sm:$0xff] }
  0x19   :  { %515 = vmatmul.msk.bf16.vlgmr.msra.gmra.mxu1 %vm117_vm0, %v644_v16  ;;  %386 = vmatpush.bf16.msrb.mxu0 %v672_v29  ;;  %v88_v36 = vperm.slane %v86_v33, 0  ;;  %v89_v37 = vperm.slane %v86_v33, 1  ;;  %v666_v52 = vld [vmem:[%s904_s5 + $0x8] sm:$0xff]  ;;  %v665_v53 = vld [vmem:[%s904_s5] sm:$0xff]  ;;  %v680_v54 = vld [vmem:[%s906_s7 + $0x38] sm:$0xff] }
  0x1a   :  { %289 = vmatpush.bf16.msra.mxu2 %v654_v17  ;;  %471 = vmatpush.bf16.msrb.mxu1 %v680_v54  ;;  %v679_v55 = vld [vmem:[%s906_s7 + $0x30] sm:$0xff]  ;;  %v678_v56 = vld [vmem:[%s906_s7 + $0x28] sm:$0xff]  ;;  %v677_v57 = vld [vmem:[%s906_s7 + $0x20] sm:$0xff] }
  0x1b   :  { %303 = vmatpush.bf16.msra.mxu3 %v662_v18  ;;  %v688_v59 = vld [vmem:[%s903_s4] ss:$0 sm:$0xff]  ;;  %v676_v6 = vld [vmem:[%s906_s7 + $0x18] sm:$0xff]  ;;  %v675_v7 = vld [vmem:[%s906_s7 + $0x10] sm:$0xff] }
  0x1c   :  { %v674_v8 = vld [vmem:[%s906_s7 + $0x8] sm:$0xff]  ;;  %v673_v9 = vld [vmem:[%s906_s7] sm:$0xff] }
  0x1d   :  { %387 = vmatpush.bf16.msrb.mxu0 %v671_v30  ;;  %v689_v11 = vld [vmem:[%s905_s6] ss:$0 sm:$0xff] }
  0x1e   :  { %290 = vmatpush.bf16.msra.mxu2 %v653_v19  ;;  %472 = vmatpush.bf16.msrb.mxu1 %v679_v55  ;;  %v690_v18 = vld [vmem:[%s907_s8] ss:$0 sm:$0xff] }
  0x1f   :  { %304 = vmatpush.bf16.msra.mxu3 %v661_v20 }
  0x21   :  { %388 = vmatpush.bf16.msrb.mxu0 %v670_v31 }
  0x22   :  { %291 = vmatpush.bf16.msra.mxu2 %v652_v21  ;;  %473 = vmatpush.bf16.msrb.mxu1 %v678_v56 }
  0x23   :  { %305 = vmatpush.bf16.msra.mxu3 %v660_v22 }
  0x25   :  { %389 = vmatpush.bf16.msrb.mxu0 %v669_v32 }
  0x26   :  { %292 = vmatpush.bf16.msra.mxu2 %v651_v23  ;;  %474 = vmatpush.bf16.msrb.mxu1 %v677_v57 }
  0x27   :  { %306 = vmatpush.bf16.msra.mxu3 %v659_v24 }
  0x29   :  { %390 = vmatpush.bf16.msrb.mxu0 %v668_v50 }
  0x2a   :  { %293 = vmatpush.bf16.msra.mxu2 %v650_v25  ;;  %475 = vmatpush.bf16.msrb.mxu1 %v676_v6 }
  0x2b   :  { %307 = vmatpush.bf16.msra.mxu3 %v658_v26 }
  0x2d   :  { %391 = vmatpush.bf16.msrb.mxu0 %v667_v51 }
  0x2e   :  { %294 = vmatpush.bf16.msra.mxu2 %v649_v27  ;;  %476 = vmatpush.bf16.msrb.mxu1 %v675_v7 }
  0x2f   :  { %308 = vmatpush.bf16.msra.mxu3 %v657_v28 }
  0x31   :  { %392 = vmatpush.bf16.msrb.mxu0 %v666_v52 }
  0x32   :  { %477 = vmatpush.bf16.msrb.mxu1 %v674_v8 }
  0x35   :  { %393 = vmatpush.bf16.msrb.mxu0 %v665_v53 }
  0x36   :  { %478 = vmatpush.bf16.msrb.mxu1 %v673_v9 }
  0x95   :  { %v130_v34 = vpop.f32.mrf.mxu0 }
  0x96   :  { %v144_v35 = vpop.f32.mrf.mxu1  ;;  %v131_v38 = vadd.f32 %v130_v34, %v88_v36 }
  0x97   :  { %v145_v39 = vadd.f32 %v144_v35, %v89_v37 }
  0x98   :  { %v149_v44 = vmax.f32 %v131_v38, 0.0 }
  0x99   :  { %v150_v46 = vmax.f32 %v145_v39, 0.0 }
  0x9d   :  { %v132_v40 = vpop.f32.mrf.mxu0 }
  0x9e   :  { %v133_v41 = vadd.f32 %v132_v40, %v88_v36  ;;  %v146_v42 = vpop.f32.mrf.mxu1 }
  0x9f   :  { %v147_v43 = vadd.f32 %v146_v42, %v89_v37 }
  0xa0   :  { %v151_v45 = vmax.f32 %v133_v41, 0.0 }
  0xa1   :  { %v152_v47 = vmax.f32 %v147_v43, 0.0 }
  0xa2   :  { %v153_v48 = vpack.c.bf16 %v151_v45, %v149_v44 }
  0xa3   :  { %v154_v49 = vpack.c.bf16 %v152_v47, %v150_v46 }
  0xa4   :  { %295 = vmatmul.bf16.vlgmr.msra.gmra.mxu2 %v153_v48 }
  0xa5   :  { %309 = vmatmul.bf16.vlgmr.msra.gmra.mxu3 %v154_v49 }
 0x127   :  { %v296_v58 = vpop.f32.mrf.mxu2 }
 0x128   :  { %v310_v60 = vpop.f32.mrf.mxu3  ;;  %v297_v61 = vadd.f32 %v688_v59, %v296_v58 }
 0x12a   :  { %v311_v63 = vadd.f32 %v310_v60, %v297_v61 }
 0x12c   :  { %v315_v3 = vmax.f32 %v311_v63, 0.0 }
 0x12f   :  { %v298_v62 = vpop.f32.mrf.mxu2 }
 0x130   :  { %v299_v0 = vadd.f32 %v688_v59, %v298_v62  ;;  %v312_v1 = vpop.f32.mrf.mxu3 }
 0x132   :  { %v313_v2 = vadd.f32 %v312_v1, %v299_v0 }
 0x134   :  { %v316_v4 = vmax.f32 %v313_v2, 0.0 }
 0x136   :  { %v317_v5 = vpack.c.bf16 %v316_v4, %v315_v3 }
 0x138   :  { %394 = vmatmul.bf16.vlgmr.msrb.gmra.mxu0 %v317_v5 }
 0x1b5   :  { %v395_v10 = vpop.f32.mrf.mxu0 }
 0x1b6   :  { %v396_v12 = vadd.f32 %v689_v11, %v395_v10 }
 0x1b8   :  { %v400_v15 = vmax.f32 %v396_v12, 0.0 }
 0x1bd   :  { %v397_v13 = vpop.f32.mrf.mxu0 }
 0x1be   :  { %v398_v14 = vadd.f32 %v689_v11, %v397_v13 }
 0x1c0   :  { %v401_v16 = vmax.f32 %v398_v14, 0.0 }
 0x1c2   :  { %v402_v17 = vpack.c.bf16 %v401_v16, %v400_v15 }
 0x1c4   :  { %479 = vmatmul.bf16.vlgmr.msrb.gmra.mxu1 %v402_v17 }
 0x241   :  { %v480_v19 = vpop.f32.mrf.mxu1 }
 0x242   :  { %v481_v20 = vadd.f32 %v690_v18, %v480_v19 }
 0x244   :  { %486 = vst.msk [vmem:[%s908_s9] sm:$0xff] %vm485_vm1, %v481_v20 }
 0x249   :  { %v482_v21 = vpop.f32.mrf.mxu1 }
 0x24a   :  { %v483_v22 = vadd.f32 %v690_v18, %v482_v21 }
 0x24c   :  { %487 = vst.msk [vmem:[%s908_s9 + $0x8] sm:$0xff] %vm485_vm1, %v483_v22 }
 0x24d   :  { %492 = vsyncpa [#allocation3], 1 }
 0x24e   :  { %493 = vsyncpa [#allocation5], 1 }

</bundles_post_ra>
